<compile_context>
chip_gen: v5e
topology: v5e:2x2
jax: 0.10.0
libtpu: 0.0.40
codegen_flags: <defaults>
</compile_context>

<pallas_src>
import jax
import jax.numpy as jnp
from jax.experimental import pallas as pl
from jax.experimental.pallas import tpu as pltpu


_LANE = 128
_TILE_BUDGET_BYTES = 8 * 1024 * 1024   # per-tile budget; ~4 live buffers => ~32 MiB resident
_VMEM_LIMIT_BYTES = 48 * 1024 * 1024   # raises v5e's 16 MiB default, < v7x's 64 MiB physical


def _dfdecision_kernel(w_ref, cy_ref, out_ref):
    # out = w1*cy**2 + w2*cy + w3 in Horner form: (w1*cy + w2)*cy + w3.
    # Compute in f32, cast on store to match the output dtype.
    w1 = w_ref[0]
    w2 = w_ref[1]
    w3 = w_ref[2]
    cy = cy_ref[...].astype(jnp.float32)
    out_ref[...] = ((w1 * cy + w2) * cy + w3).astype(out_ref.dtype)


def _lane_dense_view(shape):
    """Pick a 2D view (R, C) for this elementwise op with a lane-dense last dim."""
    n = 1
    for s in shape:
        n *= int(s)
    # Already lane-dense 2D: keep it (reshape below is then a no-op).
    if len(shape) == 2 and int(shape[-1]) >= _LANE and int(shape[-1]) % _LANE == 0:
        return int(shape[0]), int(shape[1])
    # Otherwise try to present a last dim that is a large multiple of 128 so
    # stores are unmasked full-lane vst (biggest single measured lever).
    for c in (4096, 2048, 1024, 512, 256, 128):
        if n % c == 0:
            return n // c, c
    # Fall back to the original trailing dim (small / awkward sizes).
    if len(shape) >= 2 and int(shape[-1]) > 0:
        return n // int(shape[-1]), int(shape[-1])
    return 1, max(n, 1)


def _choose_blocks(B, D, elem_bytes):
    """(8,128)-legal blocks sized against the tile budget; >=2 blocks for big inputs."""
    budget = _TILE_BUDGET_BYTES
    # Lane (last) axis: keep full D unless even an 8-row strip busts the budget;
    # then strip-mine in multiples of 128 (edge block is masked -- legal even
    # when D itself is not 128-aligned).
    if D * 8 * elem_bytes <= budget:
        block_d = D
    else:
        block_d = max(_LANE, (budget // (8 * elem_bytes)) // _LANE * _LANE)
    # Sublane axis: fill the remaining budget with rows (multiple of 8, or all of B).
    max_b = max(8, (budget // max(1, block_d * elem_bytes)) // 8 * 8)
    block_b = B if B <= max_b else max_b

    # v7x has 2 TensorCores: ensure non-trivial inputs give >= 2 parallel blocks
    # so dimension_semantics can shard the stream across both cores.
    if block_b == B and block_d == D and B >= 16 and B * D * elem_bytes > (2 << 20):
        half = (((B + 1) // 2) + 7) // 8 * 8
        if 8 <= half < B:
            block_b = half
    return block_b, block_d


def dfdecision_forward(cy, u, w1, w2, w3):
    """Pallas implementation of DFdecision.forward.

    cy: any-shape float array (reference uses (batch, input_dim))
    u:  unused (matches the PyTorch module, which ignores it)
    w1, w2, w3: scalar (shape (1,) or ()) weights; w1 is a fixed zero buffer
                in the reference module but is handled generically here.
    """
    del u  # never used by the reference forward
    orig_shape = cy.shape
    B, D = _lane_dense_view(orig_shape)
    x = cy.reshape(B, D)

    elem_bytes = jnp.dtype(cy.dtype).itemsize
    block_b, block_d = _choose_blocks(B, D, elem_bytes)
    grid = (pl.cdiv(B, block_b), pl.cdiv(D, block_d))

    # Pack the three scalar weights into a tiny f32 vector living in SMEM.
    w = jnp.concatenate([
        jnp.asarray(w1, dtype=jnp.float32).reshape(-1)[:1],
        jnp.asarray(w2, dtype=jnp.float32).reshape(-1)[:1],
        jnp.asarray(w3, dtype=jnp.float32).reshape(-1)[:1],
    ])

    n = B * D
    cost = pl.CostEstimate(
        flops=4 * n,                       # 2 mul + 2 add per element (Horner)
        transcendentals=0,
        bytes_accessed=2 * n * elem_bytes + 3 * 4,
    )

    out = pl.pallas_call(
        _dfdecision_kernel,
        out_shape=jax.ShapeDtypeStruct((B, D), cy.dtype),
        grid=grid,
        in_specs=[
            pl.BlockSpec(memory_space=pltpu.SMEM),                  # w1, w2, w3
            pl.BlockSpec((block_b, block_d), lambda i, j: (i, j)),  # cy tile
        ],
        out_specs=pl.BlockSpec((block_b, block_d), lambda i, j: (i, j)),
        compiler_params=pltpu.CompilerParams(
            dimension_semantics=("parallel", "parallel"),
            vmem_limit_bytes=_VMEM_LIMIT_BYTES,
        ),
        cost_estimate=cost,
    )(w, x)
    return out.reshape(orig_shape)


if __name__ == "__main__":
    key = jax.random.PRNGKey(0)
    k_cy, k_u, k_w2, k_w3 = jax.random.split(key, 4)

    batch = 8
    input_dim = 32  # small, consistent with the module's (batch, input_dim) input

    cy = jax.random.normal(k_cy, (batch, input_dim), dtype=jnp.float32)
    u = jax.random.normal(k_u, (batch, input_dim), dtype=jnp.float32)  # unused by forward

    # Parameters matching the module's shapes:
    w1 = jnp.array([0.0], dtype=jnp.float32)               # torch.Tensor([0]) buffer
    w2 = jax.random.normal(k_w2, (1,), dtype=jnp.float32)  # nn.Parameter(randn(1))
    w3 = jax.random.normal(k_w3, (1,), dtype=jnp.float32)  # nn.Parameter(randn(1))
    # TODO(synk): nn.Linear(input_dim, 1) exists in __init__ but is never used
    # in forward, so it is intentionally not materialized here.

    out = jax.block_until_ready(dfdecision_forward(cy, u, w1, w2, w3))

    # Pure-JAX reference (full polynomial, including the w1 term).
    ref = w1 * cy**2 + w2 * cy + w3
    assert out.shape == cy.shape
    assert jnp.allclose(out, ref, atol=1e-6, rtol=1e-6)

    # Also check a non-zero w1 (same single kernel path now).
    w1_nz = jnp.array([0.5], dtype=jnp.float32)
    out_nz = jax.block_until_ready(dfdecision_forward(cy, u, w1_nz, w2, w3))
    ref_nz = w1_nz * cy**2 + w2 * cy + w3
    assert jnp.allclose(out_nz, ref_nz, atol=1e-5, rtol=1e-5)

    print("KERNEL_OK")
</pallas_src>

<mosaic_0001>
module attributes {stable_mosaic.version = 11 : i64} {
  func.func @_dfdecision_kernel(%arg0: i32, %arg1: i32, %arg2: memref<3xf32, #tpu.memory_space<smem>>, %arg3: memref<1x256xf32, #tpu.memory_space<vmem>>, %arg4: memref<1x256xf32, #tpu.memory_space<vmem>>) attributes {dimension_semantics = [#tpu.dimension_semantics<parallel>, #tpu.dimension_semantics<parallel>], iteration_bounds = array<i64: 1, 1>, scalar_prefetch = 0 : i64, scratch_operands = 0 : i64, tpu.core_type = #tpu.core_type<tc>, window_params = [{transform_indices = @transform_0, window_bounds = array<i64: 3>}, {transform_indices = @transform_1, window_bounds = array<i64: 1, 256>}, {transform_indices = @transform_2, window_bounds = array<i64: 1, 256>}]} {
    %c0 = arith.constant 0 : index
    %0 = memref.load %arg2[%c0] : memref<3xf32, #tpu.memory_space<smem>>
    %c1 = arith.constant 1 : index
    %1 = memref.load %arg2[%c1] : memref<3xf32, #tpu.memory_space<smem>>
    %c2 = arith.constant 2 : index
    %2 = memref.load %arg2[%c2] : memref<3xf32, #tpu.memory_space<smem>>
    %c0_0 = arith.constant 0 : index
    %c0_1 = arith.constant 0 : index
    %3 = vector.load %arg3[%c0_0, %c0_1] : memref<1x256xf32, #tpu.memory_space<vmem>>, vector<1x256xf32>
    %4 = vector.broadcast %0 : f32 to vector<1x256xf32>
    %5 = arith.mulf %4, %3 : vector<1x256xf32>
    %6 = vector.broadcast %1 : f32 to vector<1x256xf32>
    %7 = arith.addf %5, %6 : vector<1x256xf32>
    %8 = arith.mulf %7, %3 : vector<1x256xf32>
    %9 = vector.broadcast %2 : f32 to vector<1x256xf32>
    %10 = arith.addf %8, %9 : vector<1x256xf32>
    %c0_2 = arith.constant 0 : index
    %c0_3 = arith.constant 0 : index
    %11 = vector.load %arg4[%c0_2, %c0_3] : memref<1x256xf32, #tpu.memory_space<vmem>>, vector<1x256xf32>
    tpu.vector_store %arg4[%c0_2, %c0_3], %10 {strides = array<i32>} : memref<1x256xf32, #tpu.memory_space<vmem>>, vector<1x256xf32>,
    return
  }
  func.func @transform_0(%arg0: i32, %arg1: i32) -> i32 {
    %c0_i32 = arith.constant 0 : i32
    %c0_i32_0 = arith.constant 0 : i32
    return %c0_i32 : i32
  }
  func.func @transform_1(%arg0: i32, %arg1: i32) -> (i32, i32) {
    %c0_i32 = arith.constant 0 : i32
    return %arg0, %arg1 : i32, i32
  }
  func.func @transform_2(%arg0: i32, %arg1: i32) -> (i32, i32) {
    %c0_i32 = arith.constant 0 : i32
    return %arg0, %arg1 : i32, i32
  }
}

</mosaic_0001>

<bundles_post_ra>
// kernel: tpu_custom_call.1
= control target key start
LH: loop header
LB: loop body
LE: loop exit
PB: predicated region body
PF: predicated region fallthrough
CT: control target
= control target key end

     0   :  { %7 = vsyncpa [#allocation5], 0  ;;  %s171_s0 = inlined_call_operand.hbm [shape: f32[3], index: 0, kind: input, shape index: {}]   ;;  %s172_s1 = inlined_call_operand.hbm [shape: f32[1,256], index: 1, kind: input, shape index: {}]   ;;  %s173_s2 = inlined_call_operand.hbm [shape: f32[1,256], index: 2, kind: output, shape index: {}]  }
   0x1   :  { %8 = vsyncpa [#allocation3], 0 }
   0x2   :  { %9 = vsyncpa [#allocation4], 0  ;;  %s15_s11 = sshll.u32 %s171_s0, 4  ;;  %s24_s14 = sshll.u32 %s172_s1, 4  ;;  %s16_s11 = int_to_ptr.hbm [resolvable:$true] %s15_s11  ;;  %s25_s14 = int_to_ptr.hbm [resolvable:$true] %s24_s14 }
   0x3   :  { %s144_s15 = smov [#allocation2]   ;;  %s145_s16 = smov [#allocation6]  }
   0x4   :  { %18 = dma.hbm_to_smem %s16_s11, 16, %s144_s15, [#allocation5]  }
   0x5   :  { %s26_s17 = sshll.u32 %s145_s16, 4  ;;  %s27_s17 = int_to_ptr.vmem [resolvable:$true] %s26_s17 }
   0x6   :  { %29 = dma.hbm_to_vmem [thread:$0]  %s25_s14, 32, %s27_s17, [#allocation3]  }
   0x7   :  { %138 = dma.done.wait [#allocation5], 16  }
   0x8   :  { %139 = vsyncadd [#allocation5], 4294967280 }
   0x9   :  { %140 = dma.done.wait [#allocation3], 32  }
   0xa   :  { %141 = vsyncadd [#allocation3], 4294967264 }
   0xb   :  { %38 = sfence }
   0xc   :  { %s39_s18 = sld [smem:[#allocation2]]  ;;  %v42_v0 = vld [vmem:[#allocation6] sm:$0x3]  ;;  %v50_v4 = vlaneseq  ;;  %s146_s1 = smov [#allocation7]  }
   0xd   :  { %s73_s19 = sld [smem:[#allocation2 + $0x1]]  ;;  %s60_s20 = sshll.u32 %s146_s1, 4  ;;  %s61_s20 = int_to_ptr.vmem [resolvable:$true] %s60_s20 }
   0xe   :  { %s74_s0 = sld [smem:[#allocation2 + $0x2]]  ;;  %s62_s23 = sshll.u32 %s173_s2, 4  ;;  %vm52_vm0 = vcmp.lt.s32.totalorder %v50_v4, 256  ;;  %s63_s23 = int_to_ptr.hbm [resolvable:$true] %s62_s23 }
  0x12   :  { %v43_v1 = vstv %s39_s18 }
  0x13   :  { %v44_v2 = vmul.f32 %v43_v1, %v42_v0  ;;  %v45_v3 = vstv %s73_s19 }
  0x14   :  { %v48_v6 = vstv %s74_s0 }
  0x15   :  { %v46_v5 = vadd.f32 %v45_v3, %v44_v2 }
  0x17   :  { %v47_v7 = vmul.f32 %v46_v5, %v42_v0 }
  0x19   :  { %v49_v8 = vadd.f32 %v48_v6, %v47_v7 }
  0x1b   :  { %54 = vst.msk [vmem:[#allocation7] sm:$0x3] %vm52_vm0, %v49_v8 }
  0x1c   :  { %65 = dma.vmem_to_hbm [thread:$0]  %s61_s20, 32, %s63_s23, [#allocation4]  }
  0x1d   :  { %142 = dma.done.wait [#allocation4], 32  }
  0x1e   :  { %143 = vsyncadd [#allocation4], 4294967264 }
  0x1f   :  { %70 = vsyncpa [#allocation3], 1 }
  0x20   :  { %71 = vsyncpa [#allocation4], 1 }
  0x21   :  { %72 = vsyncpa [#allocation5], 1 }

</bundles_post_ra>
